<compile_context>
chip_gen: v7x
topology: tpu7x:2x2x1
jax: 0.10.0
libtpu: 0.0.40
codegen_flags: <defaults>
</compile_context>

<pallas_src>
import functools

import jax
import jax.numpy as jnp
from jax.experimental import pallas as pl
from jax.experimental.pallas import tpu as pltpu


def _abpred_fused_kernel(x_ref, w1c_ref, b1c_ref, g_ref, bta_ref,
                         sred_ref, sbrd_ref, w2bd_ref, b2c_ref, o_ref, *, eps):
    """One row tile, ALL heads fused.

    x_ref:    (tm, H)      row tile (already gathered by positions_y)
    w1c_ref:  (H, K*H)     concat of per-head Linear1 weights, stored (in, out)
    b1c_ref:  (1, K*H)
    g_ref:    (1, K*H)     concat LayerNorm gamma
    bta_ref:  (1, K*H)     concat LayerNorm beta
    sred_ref: (K*H, K)     segment-mean matrix   (1/H inside head k's block)
    sbrd_ref: (K, K*H)     segment-broadcast matrix (1 inside head k's block)
    w2bd_ref: (K*H, K*P)   block-diagonal Linear2 weights
    b2c_ref:  (1, K*P)
    o_ref:    (tm, K*P)
    """
    x = x_ref[...]                                   # native dtype (f32 or bf16)

    # Linear1 for all heads in a single MXU pass, f32 accumulation.
    h = jnp.dot(x, w1c_ref[...], preferred_element_type=jnp.float32)
    h = h + b1c_ref[...].astype(jnp.float32)
    h = jnp.maximum(h, 0.0)                          # ReLU

    # Per-head LayerNorm (biased variance, eps inside rsqrt -> matches torch).
    # Segmented mean/var via tiny matmuls: avoids in-kernel reshapes across the
    # lane dim and keeps the work on the MXU.
    sred = sred_ref[...]
    sbrd = sbrd_ref[...]
    mean = jnp.dot(jnp.dot(h, sred, preferred_element_type=jnp.float32),
                   sbrd, preferred_element_type=jnp.float32)        # (tm, K*H)
    hc = h - mean
    var = jnp.dot(jnp.dot(hc * hc, sred, preferred_element_type=jnp.float32),
                  sbrd, preferred_element_type=jnp.float32)         # (tm, K*H)
    inv = jax.lax.rsqrt(var + eps)
    z = hc * inv * g_ref[...].astype(jnp.float32) + bta_ref[...].astype(jnp.float32)

    # Linear2 for all heads in one block-diagonal MXU pass.
    y = jnp.dot(z.astype(w2bd_ref.dtype), w2bd_ref[...],
                preferred_element_type=jnp.float32)
    y = y + b2c_ref[...].astype(jnp.float32)

    o_ref[...] = y.astype(o_ref.dtype)               # (tm, K*P), lane-dense store


def abpred_forward(x, w1, b1, gamma, beta, w2, b2, positions_y, *, eps=1e-5,
                   tm=512):
    """AbPred forward.

    x:           [M, H]       input features
    w1:          [K, H, H]    per-head first Linear weights, stored (in, out)
    b1:          [K, H]
    gamma, beta: [K, H]       per-head LayerNorm affine params
    w2:          [K, H, P]    per-head second Linear weights, stored (in, out)
    b2:          [K, P]
    positions_y: [Q] int32    row indices; applied to the INPUT since every op is
                              row-independent (AbPred(X)[pos] == AbPred(X[pos]))
    returns:     [Q, K * P]
    """
    M, H = x.shape
    K, _, P = w2.shape
    Q = int(positions_y.shape[0])
    if Q == 0:
        return jnp.zeros((0, K * P), x.dtype)

    # ---- gather first: the kernel only ever sees Q rows ----
    # TODO(synk): jnp.take clamps out-of-range indices under jit; torch indexing
    # would raise instead.
    xg = jnp.take(x, positions_y, axis=0)

    # Row tile: dtype-dependent sublane multiple, capped so a tiny Q doesn't pad up.
    sub = {4: 8, 2: 16, 1: 32}.get(jnp.dtype(x.dtype).itemsize, 8)
    tm = max(sub, (tm // sub) * sub)
    tm = min(tm, pl.cdiv(Q, sub) * sub)
    Qp = pl.cdiv(Q, tm) * tm
    xp = xg if Qp == Q else jnp.zeros((Qp, H), xg.dtype).at[:Q].set(xg)

    # ---- fold all K heads into fused operands (built once, cheap XLA ops) ----
    w1c = jnp.transpose(w1, (1, 0, 2)).reshape(H, K * H)             # x @ W1cat
    b1c = b1.reshape(1, K * H)
    gc = gamma.reshape(1, K * H)
    bc = beta.reshape(1, K * H)
    eye = jnp.eye(K, dtype=w2.dtype)
    w2bd = jnp.einsum('kc,kip->kicp', eye, w2).reshape(K * H, K * P)  # block-diag
    b2c = b2.reshape(1, K * P)
    seg = jnp.einsum('ck,i->cki', jnp.eye(K, dtype=jnp.float32),
                     jnp.ones((H,), jnp.float32)).reshape(K, K * H)
    sred = seg.T * (1.0 / H)                                          # (K*H, K)
    sbrd = seg                                                        # (K, K*H)

    grid = (Qp // tm,)

    flops = 2 * Qp * (H * K * H + K * H * K * P + 2 * (K * H * K + K * K * H))
    wbytes = int((w1c.size + w2bd.size + b1c.size + gc.size + bc.size
                  + b2c.size) * jnp.dtype(w1.dtype).itemsize
                 + (sred.size + sbrd.size) * 4)
    bytes_accessed = (int(xp.size * jnp.dtype(xp.dtype).itemsize) + wbytes
                      + int(Qp * K * P * jnp.dtype(x.dtype).itemsize))
    cost = pl.CostEstimate(flops=flops, transcendentals=Qp * K,
                           bytes_accessed=bytes_accessed)

    # VMEM budget: resident weights (x2 buffering worst case) + double-buffered
    # x / out row tiles + a few f32 (tm, K*H) temporaries.  Clamp to what the
    # device actually has (v7x has 64 MiB physical VMEM, not 128).
    itemsize = jnp.dtype(x.dtype).itemsize
    vmem_est = (2 * wbytes
                + 4 * (tm * H + tm * K * P) * itemsize
                + 4 * tm * K * H * 4)
    try:
        vmem_cap = int(pltpu.get_tpu_info().vmem_capacity_bytes)
    except Exception:  # conservative default: smallest per-TC VMEM (v7x)
        vmem_cap = 64 << 20
    vmem_limit = int(min(max(vmem_est, 8 << 20), vmem_cap - (8 << 20)))
    # TODO(synk): for very large hidden_size, the resident fused weights
    # (~K*(H^2 + H*P) elements) can exceed v7x's 64 MiB VMEM; in that regime split
    # heads into groups on an extra grid axis instead of fusing all K at once.

    out = pl.pallas_call(
        functools.partial(_abpred_fused_kernel, eps=eps),
        out_shape=jax.ShapeDtypeStruct((Qp, K * P), x.dtype),
        grid_spec=pltpu.PrefetchScalarGridSpec(
            num_scalar_prefetch=0,
            grid=grid,
            in_specs=[
                pl.BlockSpec((tm, H), lambda i: (i, 0)),          # x row tile
                pl.BlockSpec((H, K * H), lambda i: (0, 0)),       # W1cat   (resident)
                pl.BlockSpec((1, K * H), lambda i: (0, 0)),       # b1cat
                pl.BlockSpec((1, K * H), lambda i: (0, 0)),       # gamma
                pl.BlockSpec((1, K * H), lambda i: (0, 0)),       # beta
                pl.BlockSpec((K * H, K), lambda i: (0, 0)),       # segment-mean mat
                pl.BlockSpec((K, K * H), lambda i: (0, 0)),       # segment-bcast mat
                pl.BlockSpec((K * H, K * P), lambda i: (0, 0)),   # W2 block-diag
                pl.BlockSpec((1, K * P), lambda i: (0, 0)),       # b2cat
            ],
            out_specs=pl.BlockSpec((tm, K * P), lambda i: (i, 0)),
        ),
        compiler_params=pltpu.CompilerParams(
            dimension_semantics=("parallel",),
            vmem_limit_bytes=vmem_limit),
        cost_estimate=cost,
    )(xp, w1c, b1c, gc, bc, sred, sbrd, w2bd, b2c)

    return out[:Q]


def _reference(x, w1, b1, gamma, beta, w2, b2, positions_y, eps):
    h = jnp.einsum('mh,khg->kmg', x, w1) + b1[:, None, :]
    h = jnp.maximum(h, 0.0)
    mean = jnp.mean(h, axis=-1, keepdims=True)
    var = jnp.mean((h - mean) ** 2, axis=-1, keepdims=True)
    z = (h - mean) / jnp.sqrt(var + eps) * gamma[:, None, :] + beta[:, None, :]
    y = jnp.einsum('kmh,khp->kmp', z, w2) + b2[:, None, :]
    Y = jnp.transpose(y, (1, 0, 2)).reshape(x.shape[0], -1)
    return Y[positions_y]


if __name__ == "__main__":
    # Small shapes consistent with the module: hidden_size=32, number_ab=16,
    # num_outputs=2, batch of 8 feature vectors, 4 gathered positions.
    H, K, P, M = 32, 16, 2, 8
    eps = 1e-5

    key = jax.random.PRNGKey(0)
    kx, k1, kb1, k2, kb2, kg, kbt = jax.random.split(key, 7)

    x = jax.random.normal(kx, (M, H), dtype=jnp.float32)
    w1 = jax.random.normal(k1, (K, H, H), dtype=jnp.float32) * (1.0 / H ** 0.5)
    b1 = jax.random.normal(kb1, (K, H), dtype=jnp.float32) * 0.02
    gamma = 1.0 + 0.05 * jax.random.normal(kg, (K, H), dtype=jnp.float32)
    beta = 0.05 * jax.random.normal(kbt, (K, H), dtype=jnp.float32)
    w2 = jax.random.normal(k2, (K, H, P), dtype=jnp.float32) * (1.0 / H ** 0.5)
    b2 = jax.random.normal(kb2, (K, P), dtype=jnp.float32) * 0.02
    positions_y = jnp.array([0, 2, 5, 7], dtype=jnp.int32)

    out = abpred_forward(x, w1, b1, gamma, beta, w2, b2, positions_y, eps=eps)
    out = jax.block_until_ready(out)

    ref = _reference(x, w1, b1, gamma, beta, w2, b2, positions_y, eps)
    assert out.shape == (positions_y.shape[0], K * P)
    # Tolerance accounts for MXU f32 accumulation order in the segmented
    # mean/variance matmuls vs. the exact jnp.mean reference.
    assert jnp.allclose(out, ref, atol=5e-4, rtol=5e-4), "mismatch vs reference"

    print("KERNEL_OK")
</pallas_src>

<mosaic_0001>
module attributes {stable_mosaic.version = 11 : i64} {
  func.func @_abpred_fused_kernel(%arg0: i32, %arg1: memref<8x32xf32, #tpu.memory_space<vmem>>, %arg2: memref<32x512xf32, #tpu.memory_space<vmem>>, %arg3: memref<1x512xf32, #tpu.memory_space<vmem>>, %arg4: memref<1x512xf32, #tpu.memory_space<vmem>>, %arg5: memref<1x512xf32, #tpu.memory_space<vmem>>, %arg6: memref<512x16xf32, #tpu.memory_space<vmem>>, %arg7: memref<16x512xf32, #tpu.memory_space<vmem>>, %arg8: memref<512x32xf32, #tpu.memory_space<vmem>>, %arg9: memref<1x32xf32, #tpu.memory_space<vmem>>, %arg10: memref<8x32xf32, #tpu.memory_space<vmem>>) attributes {dimension_semantics = [#tpu.dimension_semantics<parallel>], iteration_bounds = array<i64: 1>, scalar_prefetch = 0 : i64, scratch_operands = 0 : i64, tpu.core_type = #tpu.core_type<tc>, window_params = [{transform_indices = @transform_0, window_bounds = array<i64: 8, 32>}, {pipeline_mode = #tpu.pipeline_mode<synchronous>, transform_indices = @transform_1, window_bounds = array<i64: 32, 512>}, {pipeline_mode = #tpu.pipeline_mode<synchronous>, transform_indices = @transform_2, window_bounds = array<i64: 1, 512>}, {pipeline_mode = #tpu.pipeline_mode<synchronous>, transform_indices = @transform_3, window_bounds = array<i64: 1, 512>}, {pipeline_mode = #tpu.pipeline_mode<synchronous>, transform_indices = @transform_4, window_bounds = array<i64: 1, 512>}, {pipeline_mode = #tpu.pipeline_mode<synchronous>, transform_indices = @transform_5, window_bounds = array<i64: 512, 16>}, {pipeline_mode = #tpu.pipeline_mode<synchronous>, transform_indices = @transform_6, window_bounds = array<i64: 16, 512>}, {pipeline_mode = #tpu.pipeline_mode<synchronous>, transform_indices = @transform_7, window_bounds = array<i64: 512, 32>}, {pipeline_mode = #tpu.pipeline_mode<synchronous>, transform_indices = @transform_8, window_bounds = array<i64: 1, 32>}, {transform_indices = @transform_9, window_bounds = array<i64: 8, 32>}]} {
    %c0 = arith.constant 0 : index
    %c0_0 = arith.constant 0 : index
    %0 = vector.load %arg1[%c0, %c0_0] : memref<8x32xf32, #tpu.memory_space<vmem>>, vector<8x32xf32>
    %c0_1 = arith.constant 0 : index
    %c0_2 = arith.constant 0 : index
    %1 = vector.load %arg2[%c0_1, %c0_2] : memref<32x512xf32, #tpu.memory_space<vmem>>, vector<32x512xf32>
    %cst = arith.constant dense<0.000000e+00> : vector<8x512xf32>
    %2 = tpu.matmul %0, %1, %cst {dimension_numbers = #tpu.dot_dimension_numbers<[1], [0], [0], [1], [0, 0, 1, 1], [], []>} : vector<8x32xf32>, vector<32x512xf32>, vector<8x512xf32> -> vector<8x512xf32>
    %c0_3 = arith.constant 0 : index
    %c0_4 = arith.constant 0 : index
    %3 = vector.load %arg3[%c0_3, %c0_4] : memref<1x512xf32, #tpu.memory_space<vmem>>, vector<1x512xf32>
    %4 = vector.broadcast %3 : vector<1x512xf32> to vector<8x512xf32>
    %5 = arith.addf %2, %4 : vector<8x512xf32>
    %cst_5 = arith.constant 0.000000e+00 : f32
    %6 = vector.broadcast %cst_5 : f32 to vector<8x512xf32>
    %7 = arith.maximumf %5, %6 : vector<8x512xf32>
    %c0_6 = arith.constant 0 : index
    %c0_7 = arith.constant 0 : index
    %8 = vector.load %arg6[%c0_6, %c0_7] : memref<512x16xf32, #tpu.memory_space<vmem>>, vector<512x16xf32>
    %c0_8 = arith.constant 0 : index
    %c0_9 = arith.constant 0 : index
    %9 = vector.load %arg7[%c0_8, %c0_9] : memref<16x512xf32, #tpu.memory_space<vmem>>, vector<16x512xf32>
    %cst_10 = arith.constant dense<0.000000e+00> : vector<8x16xf32>
    %10 = tpu.matmul %7, %8, %cst_10 {dimension_numbers = #tpu.dot_dimension_numbers<[1], [0], [0], [1], [0, 0, 1, 1], [], []>} : vector<8x512xf32>, vector<512x16xf32>, vector<8x16xf32> -> vector<8x16xf32>
    %cst_11 = arith.constant dense<0.000000e+00> : vector<8x512xf32>
    %11 = tpu.matmul %10, %9, %cst_11 {dimension_numbers = #tpu.dot_dimension_numbers<[1], [0], [0], [1], [0, 0, 1, 1], [], []>} : vector<8x16xf32>, vector<16x512xf32>, vector<8x512xf32> -> vector<8x512xf32>
    %12 = arith.subf %7, %11 : vector<8x512xf32>
    %13 = arith.mulf %12, %12 : vector<8x512xf32>
    %cst_12 = arith.constant dense<0.000000e+00> : vector<8x16xf32>
    %14 = tpu.matmul %13, %8, %cst_12 {dimension_numbers = #tpu.dot_dimension_numbers<[1], [0], [0], [1], [0, 0, 1, 1], [], []>} : vector<8x512xf32>, vector<512x16xf32>, vector<8x16xf32> -> vector<8x16xf32>
    %cst_13 = arith.constant dense<0.000000e+00> : vector<8x512xf32>
    %15 = tpu.matmul %14, %9, %cst_13 {dimension_numbers = #tpu.dot_dimension_numbers<[1], [0], [0], [1], [0, 0, 1, 1], [], []>} : vector<8x16xf32>, vector<16x512xf32>, vector<8x512xf32> -> vector<8x512xf32>
    %cst_14 = arith.constant 9.99999974E-6 : f32
    %16 = vector.broadcast %cst_14 : f32 to vector<8x512xf32>
    %17 = arith.addf %15, %16 : vector<8x512xf32>
    %18 = math.rsqrt %17 : vector<8x512xf32>
    %19 = arith.mulf %12, %18 : vector<8x512xf32>
    %c0_15 = arith.constant 0 : index
    %c0_16 = arith.constant 0 : index
    %20 = vector.load %arg4[%c0_15, %c0_16] : memref<1x512xf32, #tpu.memory_space<vmem>>, vector<1x512xf32>
    %21 = vector.broadcast %20 : vector<1x512xf32> to vector<8x512xf32>
    %22 = arith.mulf %19, %21 : vector<8x512xf32>
    %c0_17 = arith.constant 0 : index
    %c0_18 = arith.constant 0 : index
    %23 = vector.load %arg5[%c0_17, %c0_18] : memref<1x512xf32, #tpu.memory_space<vmem>>, vector<1x512xf32>
    %24 = vector.broadcast %23 : vector<1x512xf32> to vector<8x512xf32>
    %25 = arith.addf %22, %24 : vector<8x512xf32>
    %c0_19 = arith.constant 0 : index
    %c0_20 = arith.constant 0 : index
    %26 = vector.load %arg8[%c0_19, %c0_20] : memref<512x32xf32, #tpu.memory_space<vmem>>, vector<512x32xf32>
    %cst_21 = arith.constant dense<0.000000e+00> : vector<8x32xf32>
    %27 = tpu.matmul %25, %26, %cst_21 {dimension_numbers = #tpu.dot_dimension_numbers<[1], [0], [0], [1], [0, 0, 1, 1], [], []>} : vector<8x512xf32>, vector<512x32xf32>, vector<8x32xf32> -> vector<8x32xf32>
    %c0_22 = arith.constant 0 : index
    %c0_23 = arith.constant 0 : index
    %28 = vector.load %arg9[%c0_22, %c0_23] : memref<1x32xf32, #tpu.memory_space<vmem>>, vector<1x32xf32>
    %29 = vector.broadcast %28 : vector<1x32xf32> to vector<8x32xf32>
    %30 = arith.addf %27, %29 : vector<8x32xf32>
    %c0_24 = arith.constant 0 : index
    %c0_25 = arith.constant 0 : index
    %31 = vector.load %arg10[%c0_24, %c0_25] : memref<8x32xf32, #tpu.memory_space<vmem>>, vector<8x32xf32>
    tpu.vector_store %arg10[%c0_24, %c0_25], %30 {strides = array<i32>} : memref<8x32xf32, #tpu.memory_space<vmem>>, vector<8x32xf32>,
    return
  }
  func.func @transform_0(%arg0: i32) -> (i32, i32) {
    %c0_i32 = arith.constant 0 : i32
    %c0_i32_0 = arith.constant 0 : i32
    return %arg0, %c0_i32 : i32, i32
  }
  func.func @transform_1(%arg0: i32) -> (i32, i32) {
    %c0_i32 = arith.constant 0 : i32
    %c0_i32_0 = arith.constant 0 : i32
    %c0_i32_1 = arith.constant 0 : i32
    return %c0_i32, %c0_i32_0 : i32, i32
  }
  func.func @transform_2(%arg0: i32) -> (i32, i32) {
    %c0_i32 = arith.constant 0 : i32
    %c0_i32_0 = arith.constant 0 : i32
    %c0_i32_1 = arith.constant 0 : i32
    return %c0_i32, %c0_i32_0 : i32, i32
  }
  func.func @transform_3(%arg0: i32) -> (i32, i32) {
    %c0_i32 = arith.constant 0 : i32
    %c0_i32_0 = arith.constant 0 : i32
    %c0_i32_1 = arith.constant 0 : i32
    return %c0_i32, %c0_i32_0 : i32, i32
  }
  func.func @transform_4(%arg0: i32) -> (i32, i32) {
    %c0_i32 = arith.constant 0 : i32
    %c0_i32_0 = arith.constant 0 : i32
    %c0_i32_1 = arith.constant 0 : i32
    return %c0_i32, %c0_i32_0 : i32, i32
  }
  func.func @transform_5(%arg0: i32) -> (i32, i32) {
    %c0_i32 = arith.constant 0 : i32
    %c0_i32_0 = arith.constant 0 : i32
    %c0_i32_1 = arith.constant 0 : i32
    return %c0_i32, %c0_i32_0 : i32, i32
  }
  func.func @transform_6(%arg0: i32) -> (i32, i32) {
    %c0_i32 = arith.constant 0 : i32
    %c0_i32_0 = arith.constant 0 : i32
    %c0_i32_1 = arith.constant 0 : i32
    return %c0_i32, %c0_i32_0 : i32, i32
  }
  func.func @transform_7(%arg0: i32) -> (i32, i32) {
    %c0_i32 = arith.constant 0 : i32
    %c0_i32_0 = arith.constant 0 : i32
    %c0_i32_1 = arith.constant 0 : i32
    return %c0_i32, %c0_i32_0 : i32, i32
  }
  func.func @transform_8(%arg0: i32) -> (i32, i32) {
    %c0_i32 = arith.constant 0 : i32
    %c0_i32_0 = arith.constant 0 : i32
    %c0_i32_1 = arith.constant 0 : i32
    return %c0_i32, %c0_i32_0 : i32, i32
  }
  func.func @transform_9(%arg0: i32) -> (i32, i32) {
    %c0_i32 = arith.constant 0 : i32
    %c0_i32_0 = arith.constant 0 : i32
    return %arg0, %c0_i32 : i32, i32
  }
}

</mosaic_0001>

<bundles_post_ra>
// kernel: tpu_custom_call.1
= control target key start
LH: loop header
LB: loop body
LE: loop exit
PB: predicated region body
PF: predicated region fallthrough
CT: control target
= control target key end

     0   :  { %v1634_v7 = vmov 0.0   ;;  %vm72_vm0 = vcmask 261120   ;;  %s2386_s0 = inlined_call_operand.vmem [shape: f32[8,32], index: 0, kind: input, shape index: {}]   ;;  %s2387_s1 = inlined_call_operand.vmem [shape: f32[32,512], index: 1, kind: input, shape index: {}]   ;;  %s2388_s2 = inlined_call_operand.vmem [shape: f32[1,512], index: 2, kind: input, shape index: {}]   ;;  %s2389_s3 = inlined_call_operand.vmem [shape: f32[1,512], index: 3, kind: input, shape index: {}]   ;;  %s2390_s4 = inlined_call_operand.vmem [shape: f32[1,512], index: 4, kind: input, shape index: {}]   ;;  %s2391_s5 = inlined_call_operand.vmem [shape: f32[512,16], index: 5, kind: input, shape index: {}]   ;;  %s2392_s6 = inlined_call_operand.vmem [shape: f32[16,512], index: 6, kind: input, shape index: {}]   ;;  %s2393_s7 = inlined_call_operand.vmem [shape: f32[512,32], index: 7, kind: input, shape index: {}]   ;;  %s2394_s8 = inlined_call_operand.vmem [shape: f32[1,32], index: 8, kind: input, shape index: {}]   ;;  %s2395_s9 = inlined_call_operand.hbm [shape: f32[8,32], index: 9, kind: output, shape index: {}]  }
   0x1   :  { %v35_v0 = vld [vmem:[%s2387_s1 + $0x8] sm:$0xff]  ;;  %v37_v2 = vld [vmem:[%s2387_s1 + $0x18] sm:$0xff]  ;;  %v34_v5 = vld [vmem:[%s2387_s1] sm:$0xff]  ;;  %140 = vmatprep.mubr.f32.mxu0 %v1634_v7  ;;  %211 = vmatprep.mubr.f32.mxu1 %v1634_v7 }
   0x2   :  { %v39_v1 = vld [vmem:[%s2387_s1 + $0x28] sm:$0xff]  ;;  %v41_v4 = vld [vmem:[%s2387_s1 + $0x38] sm:$0xff]  ;;  %v38_v6 = vld [vmem:[%s2387_s1 + $0x20] sm:$0xff] }
   0x3   :  { %v1376_v3 = vpack.c.bf16 %v39_v1, %v35_v0  ;;  %v1384_v8 = vpack.c.bf16 %v41_v4, %v37_v2  ;;  %v1378_v9 = vpack.c.bf16 %v38_v6, %v34_v5  ;;  %v36_v10 = vld [vmem:[%s2387_s1 + $0x10] sm:$0xff]  ;;  %v43_v12 = vld [vmem:[%s2387_s1 + $0x48] sm:$0xff]  ;;  %v45_v15 = vld [vmem:[%s2387_s1 + $0x58] sm:$0xff] }
   0x4   :  { %v40_v11 = vld [vmem:[%s2387_s1 + $0x30] sm:$0xff]  ;;  %v47_v14 = vld [vmem:[%s2387_s1 + $0x68] sm:$0xff]  ;;  %v49_v16 = vld [vmem:[%s2387_s1 + $0x78] sm:$0xff] }
   0x5   :  { %1377 = vmatprep.subr.bf16.mxu0 %v1376_v3  ;;  %v1386_v13 = vpack.c.bf16 %v40_v11, %v36_v10  ;;  %1385 = vmatprep.subr.bf16.mxu1 %v1384_v8  ;;  %v1380_v17 = vpack.c.bf16 %v47_v14, %v43_v12  ;;  %v1388_v18 = vpack.c.bf16 %v49_v16, %v45_v15  ;;  %v42_v19 = vld [vmem:[%s2387_s1 + $0x40] sm:$0xff]  ;;  %v44_v21 = vld [vmem:[%s2387_s1 + $0x50] sm:$0xff]  ;;  %v239_v27 = vld [vmem:[%s2391_s5 + $0x88] sm:$0xff] }
   0x6   :  { %1379 = vmatpush1.bf16.msra.mxu0 %v1378_v9  ;;  %v46_v20 = vld [vmem:[%s2387_s1 + $0x60] sm:$0xff]  ;;  %v48_v23 = vld [vmem:[%s2387_s1 + $0x70] sm:$0xff]  ;;  %v271_v29 = vld [vmem:[%s2391_s5 + $0x188] sm:$0xff] }
   0x7   :  { %1387 = vmatpush1.bf16.msra.mxu1 %v1386_v13  ;;  %v1382_v22 = vpack.c.bf16 %v46_v20, %v42_v19  ;;  %v238_v24 = vld [vmem:[%s2391_s5 + $0x80] sm:$0xff]  ;;  %1381 = vmatprep.subr.bf16.mxu0 %v1380_v17  ;;  %v1390_v25 = vpack.c.bf16 %v48_v23, %v44_v21  ;;  %v223_v33 = vld [vmem:[%s2391_s5 + $0x8] sm:$0xff]  ;;  %v240_v37 = vld [vmem:[%s2391_s5 + $0x90] sm:$0xff] }
   0x8   :  { %1389 = vmatprep.subr.bf16.mxu1 %v1388_v18  ;;  %v33_v26 = vld [vmem:[%s2386_s0] sm:$0xff]  ;;  %v1751_v30 = vpack.c.bf16 %v239_v27, %v238_v24  ;;  %v255_v36 = vld [vmem:[%s2391_s5 + $0x108] sm:$0xff]  ;;  %v241_v38 = vld [vmem:[%s2391_s5 + $0x98] sm:$0xff] }
   0x9   :  { %v270_v28 = vld [vmem:[%s2391_s5 + $0x180] sm:$0xff]  ;;  %v1778_v40 = vpack.c.bf16 %v241_v38, %v240_v37  ;;  %v272_v41 = vld [vmem:[%s2391_s5 + $0x190] sm:$0xff]  ;;  %v273_v42 = vld [vmem:[%s2391_s5 + $0x198] sm:$0xff] }
   0xa   :  { %v1753_v31 = vpack.c.bf16 %v271_v29, %v270_v28  ;;  %v222_v32 = vld [vmem:[%s2391_s5] sm:$0xff]  ;;  %1383 = vmatpush1.bf16.msra.mxu0 %v1382_v22  ;;  %v224_v43 = vld [vmem:[%s2391_s5 + $0x10] sm:$0xff]  ;;  %v1790_v44 = vpack.c.bf16 %v273_v42, %v272_v41  ;;  %v225_v45 = vld [vmem:[%s2391_s5 + $0x18] sm:$0xff] }
   0xb   :  { %v254_v34 = vld [vmem:[%s2391_s5 + $0x100] sm:$0xff]  ;;  %v1764_v35 = vpack.c.bf16 %v223_v33, %v222_v32  ;;  %1391 = vmatpush1.bf16.msra.mxu1 %v1390_v25  ;;  %1393 = vmatprep.subr.bf16.mxu0 %v1751_v30  ;;  %v256_v46 = vld [vmem:[%s2391_s5 + $0x110] sm:$0xff]  ;;  %v257_v47 = vld [vmem:[%s2391_s5 + $0x118] sm:$0xff]  ;;  %v1813_v51 = vpack.c.bf16 %v225_v45, %v224_v43 }
   0xc   :  { %v1776_v39 = vpack.c.bf16 %v255_v36, %v254_v34  ;;  %1425 = vmatprep.subr.bf16.mxu1 %v1753_v31  ;;  %v242_v48 = vld [vmem:[%s2391_s5 + $0xa0] sm:$0xff]  ;;  %v243_v49 = vld [vmem:[%s2391_s5 + $0xa8] sm:$0xff]  ;;  %v1820_v53 = vpack.c.bf16 %v257_v47, %v256_v46  ;;  %v244_v60 = vld [vmem:[%s2391_s5 + $0xb0] sm:$0xff] }
   0xd   :  { %1159 = vmatmul.mubr.msk.f32.vlgmr.msra.gmra.mrb[0].mxu0 %vm72_vm0, %v33_v26  ;;  %v274_v50 = vld [vmem:[%s2391_s5 + $0x1a0] sm:$0xff]  ;;  %v275_v52 = vld [vmem:[%s2391_s5 + $0x1a8] sm:$0xff]  ;;  %v1822_v54 = vpack.c.bf16 %v243_v49, %v242_v48  ;;  %v245_v61 = vld [vmem:[%s2391_s5 + $0xb8] sm:$0xff] }
   0xe   :  { %1160 = vmatmul.mubr.msk.f32.vlgmr.msra.gmra.mrb[0].mxu1 %vm72_vm0, %v33_v26  ;;  %1395 = vmatpush3.bf16.msra.mxu0 %v1764_v35  ;;  %v226_v55 = vld [vmem:[%s2391_s5 + $0x20] sm:$0xff]  ;;  %v227_v56 = vld [vmem:[%s2391_s5 + $0x28] sm:$0xff]  ;;  %v1834_v58 = vpack.c.bf16 %v275_v52, %v274_v50  ;;  %v276_v62 = vld [vmem:[%s2391_s5 + $0x1b0] sm:$0xff]  ;;  %v1858_v2 = vpack.c.bf16 %v245_v61, %v244_v60 }
   0xf   :  { %1427 = vmatpush3.bf16.msra.mxu1 %v1776_v39  ;;  %1397 = vmatprep.subr.bf16.mxu0 %v1778_v40  ;;  %v258_v57 = vld [vmem:[%s2391_s5 + $0x120] sm:$0xff]  ;;  %v259_v59 = vld [vmem:[%s2391_s5 + $0x128] sm:$0xff]  ;;  %v277_v63 = vld [vmem:[%s2391_s5 + $0x1b8] sm:$0xff]  ;;  %v1852_v0 = vpack.c.bf16 %v227_v56, %v226_v55 }
  0x10   :  { %1429 = vmatprep.subr.bf16.mxu1 %v1790_v44  ;;  %v1856_v1 = vpack.c.bf16 %v259_v59, %v258_v57  ;;  %v228_v3 = vld [vmem:[%s2391_s5 + $0x30] sm:$0xff]  ;;  %v229_v4 = vld [vmem:[%s2391_s5 + $0x38] sm:$0xff]  ;;  %v1870_v6 = vpack.c.bf16 %v277_v63, %v276_v62  ;;  %v246_v9 = vld [vmem:[%s2391_s5 + $0xc0] sm:$0xff] }
  0x11   :  { %v260_v5 = vld [vmem:[%s2391_s5 + $0x130] sm:$0xff]  ;;  %v261_v8 = vld [vmem:[%s2391_s5 + $0x138] sm:$0xff]  ;;  %v247_v10 = vld [vmem:[%s2391_s5 + $0xc8] sm:$0xff]  ;;  %v1888_v13 = vpack.c.bf16 %v229_v4, %v228_v3 }
  0x12   :  { %1399 = vmatpush3.bf16.msra.mxu0 %v1813_v51  ;;  %v278_v11 = vld [vmem:[%s2391_s5 + $0x1c0] sm:$0xff]  ;;  %v279_v12 = vld [vmem:[%s2391_s5 + $0x1c8] sm:$0xff]  ;;  %v1892_v14 = vpack.c.bf16 %v261_v8, %v260_v5  ;;  %v1894_v15 = vpack.c.bf16 %v247_v10, %v246_v9  ;;  %v248_v21 = vld [vmem:[%s2391_s5 + $0xd0] sm:$0xff] }
  0x13   :  { %1431 = vmatpush3.bf16.msra.mxu1 %v1820_v53  ;;  %1401 = vmatprep.subr.bf16.mxu0 %v1822_v54  ;;  %v230_v16 = vld [vmem:[%s2391_s5 + $0x40] sm:$0xff]  ;;  %v231_v17 = vld [vmem:[%s2391_s5 + $0x48] sm:$0xff]  ;;  %v1906_v19 = vpack.c.bf16 %v279_v12, %v278_v11  ;;  %v249_v22 = vld [vmem:[%s2391_s5 + $0xd8] sm:$0xff] }
  0x14   :  { %1433 = vmatprep.subr.bf16.mxu1 %v1834_v58  ;;  %v262_v18 = vld [vmem:[%s2391_s5 + $0x140] sm:$0xff]  ;;  %v263_v20 = vld [vmem:[%s2391_s5 + $0x148] sm:$0xff]  ;;  %v280_v23 = vld [vmem:[%s2391_s5 + $0x1d0] sm:$0xff] }
  0x15   :  { %v281_v24 = vld [vmem:[%s2391_s5 + $0x1d8] sm:$0xff] }
  0x16   :  { %1403 = vmatpush3.bf16.msra.mxu0 %v1852_v0 }
  0x17   :  { %1435 = vmatpush3.bf16.msra.mxu1 %v1856_v1  ;;  %1405 = vmatprep.subr.bf16.mxu0 %v1858_v2 }
  0x18   :  { %1437 = vmatprep.subr.bf16.mxu1 %v1870_v6 }
  0x19   :  { %14 = vsyncpa [#allocation3], 0  ;;  %v1924_v25 = vpack.c.bf16 %v231_v17, %v230_v16  ;;  %v1928_v26 = vpack.c.bf16 %v263_v20, %v262_v18  ;;  %v1930_v27 = vpack.c.bf16 %v249_v22, %v248_v21  ;;  %v232_v28 = vld [vmem:[%s2391_s5 + $0x50] sm:$0xff]  ;;  %v233_v29 = vld [vmem:[%s2391_s5 + $0x58] sm:$0xff]  ;;  %v1942_v33 = vpack.c.bf16 %v281_v24, %v280_v23  ;;  %s1635_s1 = smov [#allocation2]  }
  0x1a   :  { %1407 = vmatpush3.bf16.msra.mxu0 %v1888_v13  ;;  %v264_v32 = vld [vmem:[%s2391_s5 + $0x150] sm:$0xff]  ;;  %v265_v34 = vld [vmem:[%s2391_s5 + $0x158] sm:$0xff]  ;;  %v250_v36 = vld [vmem:[%s2391_s5 + $0xe0] sm:$0xff]  ;;  %v1960_v42 = vpack.c.bf16 %v233_v29, %v232_v28  ;;  %v52_v10 = vlaneseq  ;;  %vm434_vm1 = vcmask 130048   ;;  %s1151_s28 = sshll.u32 %s1635_s1, 4  ;;  %s1152_s28 = int_to_ptr.vmem [resolvable:$true] %s1151_s28 }
  0x1b   :  { %1439 = vmatpush3.bf16.msra.mxu1 %v1892_v14  ;;  %1409 = vmatprep.subr.bf16.mxu0 %v1894_v15  ;;  %v251_v37 = vld [vmem:[%s2391_s5 + $0xe8] sm:$0xff]  ;;  %v282_v38 = vld [vmem:[%s2391_s5 + $0x1e0] sm:$0xff]  ;;  %v1964_v43 = vpack.c.bf16 %v265_v34, %v264_v32  ;;  %v252_v56 = vld [vmem:[%s2391_s5 + $0xf0] sm:$0xff]  ;;  %s1610_s29 = scalar_lea.vmem %s1152_s28, 128  ;;  %p1615_p1 = scmp.lt.s32.totalorder %s1152_s28, %s1152_s28 }
  0x1c   :  { %1441 = vmatprep.subr.bf16.mxu1 %v1906_v19  ;;  %v283_v41 = vld [vmem:[%s2391_s5 + $0x1e8] sm:$0xff]  ;;  %v1966_v45 = vpack.c.bf16 %v251_v37, %v250_v36  ;;  %v234_v47 = vld [vmem:[%s2391_s5 + $0x60] sm:$0xff]  ;;  %v253_v57 = vld [vmem:[%s2391_s5 + $0xf8] sm:$0xff]  ;;  %v53_v11 = vshrl.u32 %v52_v10, 7  ;;  %p1611_p0 = scmp.ne.s32.totalorder %s1152_s28, %s1610_s29  ;;  %p1616_p2 = scmp.lt.s32.totalorder %s1610_s29, %s1610_s29 }
  0x1d   :  { %v1969_v46 = vpack.c.bf16 %v283_v41, %v282_v38  ;;  %v235_v48 = vld [vmem:[%s2391_s5 + $0x68] sm:$0xff]  ;;  %v266_v49 = vld [vmem:[%s2391_s5 + $0x160] sm:$0xff]  ;;  %v284_v59 = vld [vmem:[%s2391_s5 + $0x1f0] sm:$0xff]  ;;  %v2002_v60 = vpack.c.bf16 %v253_v57, %v252_v56 }
  0x1e   :  { %1411 = vmatpush3.bf16.msra.mxu0 %v1924_v25  ;;  %v1984_v50 = vpack.c.bf16 %v235_v48, %v234_v47  ;;  %v267_v52 = vld [vmem:[%s2391_s5 + $0x168] sm:$0xff]  ;;  %v285_v61 = vld [vmem:[%s2391_s5 + $0x1f8] sm:$0xff]  ;;  %v236_v62 = vld [vmem:[%s2391_s5 + $0x70] sm:$0xff]  ;;  %v2029_v12 = vsub.s32 0, %v53_v11  ;;  %v2034_v17 = vsub.s32 2, %v53_v11  ;;  %v2036_v18 = vsub.s32 1, %v53_v11  ;;  %p1617_p3 = por %p1616_p2, %p1615_p1 }
  0x1f   :  { %1443 = vmatpush3.bf16.msra.mxu1 %v1928_v26  ;;  %1413 = vmatprep.subr.bf16.mxu0 %v1930_v27  ;;  %v1989_v55 = vpack.c.bf16 %v267_v52, %v266_v49  ;;  %v237_v63 = vld [vmem:[%s2391_s5 + $0x78] sm:$0xff]  ;;  %v2013_v3 = vpack.c.bf16 %v285_v61, %v284_v59  ;;  %v268_v5 = vld [vmem:[%s2391_s5 + $0x170] sm:$0xff]  ;;  %v50_v16 = vld [vmem:[%s2388_s2] sm:$0xf]  ;;  %v2038_v20 = vsub.s32 3, %v53_v11 }
  0x20   :  { %1445 = vmatprep.subr.bf16.mxu1 %v1942_v33  ;;  %v2015_v4 = vpack.c.bf16 %v237_v63, %v236_v62  ;;  %v269_v8 = vld [vmem:[%s2391_s5 + $0x178] sm:$0xff]  ;;  %v55_v21 = vrot.slane %v50_v16, %v2029_v12  ;;  %v63_v22 = vrot.slane %v50_v16, %v2034_v17  ;;  %v59_v23 = vrot.slane %v50_v16, %v2036_v18  ;;  %v287_v56 = vld [vmem:[%s2392_s6 + $0x8] sm:$0xff]  ;;  %v286_v63 = vld [vmem:[%s2392_s6] sm:$0xff]  ;;  %p1618_p4 = pnand %p1617_p3, %p1611_p0 }
  0x21   :  { %v2024_v9 = vpack.c.bf16 %v269_v8, %v268_v5  ;;  %v67_v24 = vrot.slane %v50_v16, %v2038_v20  ;;  %v291_v57 = vld [vmem:[%s2392_s6 + $0x28] sm:$0xff]  ;;  %v289_v59 = vld [vmem:[%s2392_s6 + $0x18] sm:$0xff]  ;;  %v290_v5 = vld [vmem:[%s2392_s6 + $0x20] sm:$0xff] }
  0x22   :  { %1415 = vmatpush3.bf16.msra.mxu0 %v1960_v42  ;;  %v1456_v61 = vpack.c.bf16 %v291_v57, %v287_v56  ;;  %v293_v62 = vld [vmem:[%s2392_s6 + $0x38] sm:$0xff]  ;;  %v2084_v10 = vpack.c.bf16 %v290_v5, %v286_v63  ;;  %v288_v11 = vld [vmem:[%s2392_s6 + $0x10] sm:$0xff]  ;;  %v953_v56 = vld [vmem:[%s2393_s7 + $0xa0] sm:$0xff] }
  0x23   :  { %1447 = vmatpush3.bf16.msra.mxu1 %v1964_v43  ;;  %1417 = vmatprep.subr.bf16.mxu0 %v1966_v45  ;;  %v1460_v8 = vpack.c.bf16 %v293_v62, %v289_v59  ;;  %v292_v16 = vld [vmem:[%s2392_s6 + $0x30] sm:$0xff]  ;;  %v954_v57 = vld [vmem:[%s2393_s7 + $0xa8] sm:$0xff]  ;;  %v985_v59 = vld [vmem:[%s2393_s7 + $0x1a0] sm:$0xff] }
  0x24   :  { %1449 = vmatprep.subr.bf16.mxu1 %v1969_v46  ;;  %v937_v5 = vld [vmem:[%s2393_s7 + $0x20] sm:$0xff] }
  0x26   :  { %1419 = vmatpush3.bf16.msra.mxu0 %v1984_v50 }
  0x27   :  { %1451 = vmatpush3.bf16.msra.mxu1 %v1989_v55  ;;  %1421 = vmatprep.subr.bf16.mxu0 %v2002_v60 }
  0x28   :  { %1453 = vmatprep.subr.bf16.mxu1 %v2013_v3 }
  0x2a   :  { %1423 = vmatpush3.bf16.msra.mxu0 %v2015_v4 }
  0x2b   :  { %1455 = vmatpush3.bf16.msra.mxu1 %v2024_v9  ;;  %1457 = vmatprep.subr.bf16.mxu0 %v1456_v61 }
  0x2c   :  { %1461 = vmatprep.subr.bf16.mxu1 %v1460_v8 }
  0xe0   :  { %v142_v28 = vpop.f32.mrb[0].mxu0 }
  0xe1   :  { %v2044_v29 = vadd.f32 %v142_v28, %v55_v21  ;;  %v213_v32 = vpop.f32.mrb[0].mxu1  ;;  %v144_v34 = vpop.f32.mrb[1].mxu0  ;;  %v2092_v21 = vpack.c.bf16 %v292_v16, %v288_v11  ;;  %v938_v11 = vld [vmem:[%s2393_s7 + $0x28] sm:$0xff]  ;;  %v969_v16 = vld [vmem:[%s2393_s7 + $0x120] sm:$0xff] }
  0xe2   :  { %v2046_v36 = vadd.f32 %v213_v32, %v63_v22  ;;  %v2048_v37 = vadd.f32 %v144_v34, %v59_v23  ;;  %v215_v38 = vpop.f32.mrb[1].mxu1 }
  0xe3   :  { %v2050_v41 = vadd.f32 %v215_v38, %v67_v24  ;;  %v218_v48 = vmax.f32 %v2044_v29, 0.0 }
  0xe4   :  { %v219_v47 = vmax.f32 %v2048_v37, 0.0  ;;  %v220_v52 = vmax.f32 %v2046_v36, 0.0  ;;  %v935_v36 = vld [vmem:[%s2393_s7 + $0x10] sm:$0xff]  ;;  %v936_v37 = vld [vmem:[%s2393_s7 + $0x18] sm:$0xff] }
  0xe5   :  { %v221_v49 = vmax.f32 %v2050_v41, 0.0  ;;  %v1542_v62 = vpack.c.bf16 %v936_v37, %v935_v36  ;;  %v961_v36 = vld [vmem:[%s2393_s7 + $0xe0] sm:$0xff]  ;;  %v962_v37 = vld [vmem:[%s2393_s7 + $0xe8] sm:$0xff] }
  0xe6   :  { %358 = vmatprep.mubr.f32.mxu0 %v219_v47 }
  0xe7   :  { %428 = vmatprep.mubr.f32.mxu1 %v221_v49  ;;  %359 = vmatmul.mubr.f32.vlgmr.msra.gmra.mrb[2].mxu0 %v218_v48 }
  0xe8   :  { %429 = vmatmul.mubr.f32.vlgmr.msra.gmra.mrb[2].mxu1 %v220_v52  ;;  %502 = vmatprep.mubr.f32.mxu0 %v1634_v7 }
  0xe9   :  { %573 = vmatprep.mubr.f32.mxu1 %v1634_v7  ;;  %1459 = vmatpush1.bf16.msra.mxu0 %v2084_v10 }
  0xea   :  { %1463 = vmatpush1.bf16.msra.mxu1 %v2092_v21  ;;  %1465 = vmatprep.subr.bf16.mxu0 %v1751_v30 }
  0xeb   :  { %1497 = vmatprep.subr.bf16.mxu1 %v1753_v31 }
 0x1ba   :  { %v1198_v22 = vpop.f32.mrb[2].mxu0 }
 0x1bb   :  { %v1233_v23 = vpop.f32.mrb[2].mxu1  ;;  %v1199_v24 = vpop.f32.mrb[3].mxu0 }
 0x1bc   :  { %v1200_v28 = vadd.f32 %v1199_v24, %v1198_v22  ;;  %v1234_v32 = vpop.f32.mrb[3].mxu1  ;;  %v1546_v22 = vpack.c.bf16 %v938_v11, %v937_v5  ;;  %v955_v24 = vld [vmem:[%s2393_s7 + $0xb0] sm:$0xff]  ;;  %v964_v5 = vld [vmem:[%s2393_s7 + $0xf8] sm:$0xff] }
 0x1bd   :  { %v1235_v34 = vadd.f32 %v1234_v32, %v1233_v23  ;;  %v987_v32 = vld [vmem:[%s2393_s7 + $0x1b0] sm:$0xff] }
 0x1bf   :  { %v431_v38 = vadd.f32 %v1235_v34, %v1200_v28  ;;  %v956_v28 = vld [vmem:[%s2393_s7 + $0xb8] sm:$0xff] }
 0x1c0   :  { %v1548_v34 = vpack.c.bf16 %v956_v28, %v955_v24  ;;  %v979_v24 = vld [vmem:[%s2393_s7 + $0x170] sm:$0xff]  ;;  %v980_v28 = vld [vmem:[%s2393_s7 + $0x178] sm:$0xff] }
 0x1c1   :  { %1161 = vmatmul.mubr.msk.f32.vlgmr.msra.gmra.mrb[4].mxu0 %vm434_vm1, %v431_v38  ;;  %1162 = vmatmul.mubr.msk.f32.vlgmr.msra.gmra.mrb[4].mxu1 %vm434_vm1, %v431_v38  ;;  %v988_v38 = vld [vmem:[%s2393_s7 + $0x1b8] sm:$0xff] }
 0x1c2   :  { %1467 = vmatpush3.bf16.msra.mxu0 %v1764_v35  ;;  %1499 = vmatpush3.bf16.msra.mxu1 %v1776_v39 }
 0x1c3   :  { %1469 = vmatprep.subr.bf16.mxu0 %v1778_v40  ;;  %1501 = vmatprep.subr.bf16.mxu1 %v1790_v44 }
 0x1c6   :  { %1471 = vmatpush3.bf16.msra.mxu0 %v1813_v51  ;;  %1503 = vmatpush3.bf16.msra.mxu1 %v1820_v53 }
 0x1c7   :  { %1473 = vmatprep.subr.bf16.mxu0 %v1822_v54  ;;  %1505 = vmatprep.subr.bf16.mxu1 %v1834_v58 }
 0x1ca   :  { %1475 = vmatpush3.bf16.msra.mxu0 %v1852_v0  ;;  %1507 = vmatpush3.bf16.msra.mxu1 %v1856_v1 }
 0x1cb   :  { %1477 = vmatprep.subr.bf16.mxu0 %v1858_v2  ;;  %1509 = vmatprep.subr.bf16.mxu1 %v1870_v6  ;;  %v949_v2 = vld [vmem:[%s2393_s7 + $0x80] sm:$0xff]  ;;  %v950_v6 = vld [vmem:[%s2393_s7 + $0x88] sm:$0xff] }
 0x1ce   :  { %1479 = vmatpush3.bf16.msra.mxu0 %v1888_v13  ;;  %1511 = vmatpush3.bf16.msra.mxu1 %v1892_v14  ;;  %v981_v13 = vld [vmem:[%s2393_s7 + $0x180] sm:$0xff]  ;;  %v1536_v14 = vpack.c.bf16 %v950_v6, %v949_v2  ;;  %v958_v2 = vld [vmem:[%s2393_s7 + $0xc8] sm:$0xff] }
 0x1cf   :  { %1481 = vmatprep.subr.bf16.mxu0 %v1894_v15  ;;  %1513 = vmatprep.subr.bf16.mxu1 %v1906_v19  ;;  %v982_v15 = vld [vmem:[%s2393_s7 + $0x188] sm:$0xff]  ;;  %v989_v6 = vld [vmem:[%s2393_s7 + $0x1c0] sm:$0xff] }
 0x1d0   :  { %v1568_v19 = vpack.c.bf16 %v982_v15, %v981_v13  ;;  %v941_v15 = vld [vmem:[%s2393_s7 + $0x40] sm:$0xff] }
 0x1d2   :  { %1483 = vmatpush3.bf16.msra.mxu0 %v1924_v25  ;;  %1515 = vmatpush3.bf16.msra.mxu1 %v1928_v26  ;;  %v934_v25 = vld [vmem:[%s2393_s7 + $0x8] sm:$0xff] }
 0x1d3   :  { %1485 = vmatprep.subr.bf16.mxu0 %v1930_v27  ;;  %1517 = vmatprep.subr.bf16.mxu1 %v1942_v33  ;;  %v965_v33 = vld [vmem:[%s2393_s7 + $0x100] sm:$0xff] }
 0x1d6   :  { %1487 = vmatpush3.bf16.msra.mxu0 %v1960_v42  ;;  %1519 = vmatpush3.bf16.msra.mxu1 %v1964_v43  ;;  %v966_v42 = vld [vmem:[%s2393_s7 + $0x108] sm:$0xff]  ;;  %v951_v43 = vld [vmem:[%s2393_s7 + $0x90] sm:$0xff] }
 0x1d7   :  { %1489 = vmatprep.subr.bf16.mxu0 %v1966_v45  ;;  %1521 = vmatprep.subr.bf16.mxu1 %v1969_v46  ;;  %v1570_v29 = vpack.c.bf16 %v966_v42, %v965_v33  ;;  %v959_v33 = vld [vmem:[%s2393_s7 + $0xd0] sm:$0xff] }
 0x1da   :  { %1491 = vmatpush3.bf16.msra.mxu0 %v1984_v50  ;;  %1523 = vmatpush3.bf16.msra.mxu1 %v1989_v55  ;;  %v952_v50 = vld [vmem:[%s2393_s7 + $0x98] sm:$0xff]  ;;  %v983_v55 = vld [vmem:[%s2393_s7 + $0x190] sm:$0xff] }
 0x1db   :  { %1493 = vmatprep.subr.bf16.mxu0 %v2002_v60  ;;  %1525 = vmatprep.subr.bf16.mxu1 %v2013_v3  ;;  %v984_v60 = vld [vmem:[%s2393_s7 + $0x198] sm:$0xff] }
 0x1de   :  { %1495 = vmatpush3.bf16.msra.mxu0 %v2015_v4  ;;  %1527 = vmatpush3.bf16.msra.mxu1 %v2024_v9 }
 0x1df   :  { %1529 = vmatprep.subr.bf16.mxu0 %v1456_v61  ;;  %1533 = vmatprep.subr.bf16.mxu1 %v1460_v8  ;;  %v986_v61 = vld [vmem:[%s2393_s7 + $0x1a8] sm:$0xff]  ;;  %v1544_v8 = vpack.c.bf16 %v954_v57, %v953_v56 }
 0x1e0   :  { %v946_v57 = vld [vmem:[%s2393_s7 + $0x68] sm:$0xff] }
 0x294   :  { %v504_v30 = vpop.f32.mrb[4].mxu0  ;;  %v575_v31 = vpop.f32.mrb[4].mxu1 }
 0x295   :  { %v2132_v35 = vsub.f32 %v218_v48, %v504_v30  ;;  %v2136_v39 = vsub.f32 %v220_v52, %v575_v31  ;;  %v506_v40 = vpop.f32.mrb[5].mxu0  ;;  %v577_v44 = vpop.f32.mrb[5].mxu1  ;;  %v1572_v48 = vpack.c.bf16 %v984_v60, %v983_v55  ;;  %v968_v52 = vld [vmem:[%s2393_s7 + $0x118] sm:$0xff]  ;;  %v939_v30 = vld [vmem:[%s2393_s7 + $0x30] sm:$0xff] }
 0x296   :  { %v2140_v51 = vsub.f32 %v219_v47, %v506_v40  ;;  %v2144_v53 = vsub.f32 %v221_v49, %v577_v44  ;;  %v1540_v47 = vpack.c.bf16 %v952_v50, %v951_v43  ;;  %v967_v49 = vld [vmem:[%s2393_s7 + $0x110] sm:$0xff]  ;;  %v940_v31 = vld [vmem:[%s2393_s7 + $0x38] sm:$0xff]  ;;  %v1580_v40 = vpack.c.bf16 %v988_v38, %v987_v32 }
 0x297   :  { %v584_v0 = vmul.f32 %v2132_v35, %v2132_v35  ;;  %v586_v1 = vmul.f32 %v2136_v39, %v2136_v39  ;;  %v1574_v63 = vpack.c.bf16 %v968_v52, %v967_v49  ;;  %v1550_v44 = vpack.c.bf16 %v940_v31, %v939_v30  ;;  %v960_v43 = vld [vmem:[%s2393_s7 + $0xd8] sm:$0xff]  ;;  %v943_v60 = vld [vmem:[%s2393_s7 + $0x50] sm:$0xff]  ;;  %v994_v49 = vld [vmem:[%s2393_s7 + $0x1e8] sm:$0xff] }
 0x298   :  { %v585_v54 = vmul.f32 %v2140_v51, %v2140_v51  ;;  %v587_v58 = vmul.f32 %v2144_v53, %v2144_v53  ;;  %v1556_v50 = vpack.c.bf16 %v960_v43, %v959_v33  ;;  %v945_v52 = vld [vmem:[%s2393_s7 + $0x60] sm:$0xff] }
 0x29a   :  { %652 = vmatprep.mubr.f32.mxu0 %v585_v54  ;;  %722 = vmatprep.mubr.f32.mxu1 %v587_v58  ;;  %v971_v54 = vld [vmem:[%s2393_s7 + $0x130] sm:$0xff]  ;;  %v972_v58 = vld [vmem:[%s2393_s7 + $0x138] sm:$0xff] }
 0x29b   :  { %653 = vmatmul.mubr.f32.vlgmr.msra.gmra.mrb[6].mxu0 %v584_v0  ;;  %723 = vmatmul.mubr.f32.vlgmr.msra.gmra.mrb[6].mxu1 %v586_v1  ;;  %v1582_v0 = vpack.c.bf16 %v972_v58, %v971_v54  ;;  %v957_v1 = vld [vmem:[%s2393_s7 + $0xc0] sm:$0xff] }
 0x29c   :  { %1531 = vmatpush1.bf16.msra.mxu0 %v2084_v10  ;;  %1535 = vmatpush1.bf16.msra.mxu1 %v2092_v21  ;;  %v1576_v10 = vpack.c.bf16 %v986_v61, %v985_v59  ;;  %v970_v21 = vld [vmem:[%s2393_s7 + $0x128] sm:$0xff]  ;;  %v1552_v13 = vpack.c.bf16 %v958_v2, %v957_v1  ;;  %v977_v59 = vld [vmem:[%s2393_s7 + $0x160] sm:$0xff] }
 0x29d   :  { %795 = vmatprep.mubr.f32.mxu0 %v1634_v7  ;;  %866 = vmatprep.mubr.f32.mxu1 %v1634_v7  ;;  %v933_v7 = vld [vmem:[%s2393_s7] sm:$0xff]  ;;  %v1578_v23 = vpack.c.bf16 %v970_v21, %v969_v16  ;;  %v978_v61 = vld [vmem:[%s2393_s7 + $0x168] sm:$0xff]  ;;  %v996_v16 = vld [vmem:[%s2393_s7 + $0x1f8] sm:$0xff] }
 0x29e   :  { %1537 = vmatprep.subr.bf16.mxu0 %v1536_v14  ;;  %1569 = vmatprep.subr.bf16.mxu1 %v1568_v19  ;;  %v1538_v9 = vpack.c.bf16 %v934_v25, %v933_v7  ;;  %v990_v14 = vld [vmem:[%s2393_s7 + $0x1c8] sm:$0xff]  ;;  %v947_v21 = vld [vmem:[%s2393_s7 + $0x70] sm:$0xff]  ;;  %v881_v1 = vld [vmem:[%s2389_s3] sm:$0xf] }
 0x29f   :  { %v942_v19 = vld [vmem:[%s2393_s7 + $0x48] sm:$0xff]  ;;  %v1584_v7 = vpack.c.bf16 %v990_v14, %v989_v6  ;;  %v907_v6 = vld [vmem:[%s2390_s4] sm:$0xf] }
 0x2a0   :  { %v1554_v25 = vpack.c.bf16 %v942_v19, %v941_v15  ;;  %v890_v15 = vrot.slane %v881_v1, %v2036_v18  ;;  %v916_v43 = vrot.slane %v907_v6, %v2036_v18 }
 0x36e   :  { %v1268_v26 = vpop.f32.mrb[6].mxu0  ;;  %v1303_v27 = vpop.f32.mrb[6].mxu1 }
 0x36f   :  { %v1269_v45 = vpop.f32.mrb[7].mxu0  ;;  %v1304_v46 = vpop.f32.mrb[7].mxu1 }
 0x370   :  { %v1270_v3 = vadd.f32 %v1269_v45, %v1268_v26  ;;  %v1305_v4 = vadd.f32 %v1304_v46, %v1303_v27  ;;  %v973_v26 = vld [vmem:[%s2393_s7 + $0x140] sm:$0xff]  ;;  %v974_v27 = vld [vmem:[%s2393_s7 + $0x148] sm:$0xff]  ;;  %v991_v45 = vld [vmem:[%s2393_s7 + $0x1d0] sm:$0xff] }
 0x371   :  { %v1586_v42 = vpack.c.bf16 %v974_v27, %v973_v26  ;;  %v992_v46 = vld [vmem:[%s2393_s7 + $0x1d8] sm:$0xff]  ;;  %v898_v26 = vrot.slane %v881_v1, %v2038_v20 }
 0x372   :  { %v725_v41 = vadd.f32 %v1305_v4, %v1270_v3  ;;  %v1588_v55 = vpack.c.bf16 %v992_v46, %v991_v45  ;;  %v944_v3 = vld [vmem:[%s2393_s7 + $0x58] sm:$0xff]  ;;  %v975_v4 = vld [vmem:[%s2393_s7 + $0x150] sm:$0xff]  ;;  %v924_v46 = vrot.slane %v907_v6, %v2038_v20  ;;  %v1165_v20 = vld [vmem:[%s2394_s8] ss:$0 sm:$0xff] }
 0x374   :  { %1163 = vmatmul.mubr.msk.f32.vlgmr.msra.gmra.mrb[8].mxu0 %vm434_vm1, %v725_v41  ;;  %1164 = vmatmul.mubr.msk.f32.vlgmr.msra.gmra.mrb[8].mxu1 %vm434_vm1, %v725_v41 }
 0x375   :  { %1539 = vmatpush3.bf16.msra.mxu0 %v1538_v9  ;;  %1571 = vmatpush3.bf16.msra.mxu1 %v1570_v29  ;;  %v1558_v9 = vpack.c.bf16 %v944_v3, %v943_v60  ;;  %v976_v29 = vld [vmem:[%s2393_s7 + $0x158] sm:$0xff]  ;;  %v920_v3 = vrot.slane %v907_v6, %v2034_v17 }
 0x376   :  { %1541 = vmatprep.subr.bf16.mxu0 %v1540_v47  ;;  %1573 = vmatprep.subr.bf16.mxu1 %v1572_v48  ;;  %v1590_v41 = vpack.c.bf16 %v976_v29, %v975_v4  ;;  %v1560_v47 = vpack.c.bf16 %v962_v37, %v961_v36  ;;  %v993_v48 = vld [vmem:[%s2393_s7 + $0x1e0] sm:$0xff] }
 0x377   :  { %v1592_v56 = vpack.c.bf16 %v994_v49, %v993_v48 }
 0x379   :  { %1543 = vmatpush3.bf16.msra.mxu0 %v1542_v62  ;;  %1575 = vmatpush3.bf16.msra.mxu1 %v1574_v63  ;;  %v1562_v62 = vpack.c.bf16 %v946_v57, %v945_v52  ;;  %v963_v63 = vld [vmem:[%s2393_s7 + $0xf0] sm:$0xff] }
 0x37a   :  { %1545 = vmatprep.subr.bf16.mxu0 %v1544_v8  ;;  %1577 = vmatprep.subr.bf16.mxu1 %v1576_v10  ;;  %v995_v8 = vld [vmem:[%s2393_s7 + $0x1f0] sm:$0xff]  ;;  %v1594_v10 = vpack.c.bf16 %v978_v61, %v977_v59  ;;  %v1564_v11 = vpack.c.bf16 %v964_v5, %v963_v63 }
 0x37d   :  { %1547 = vmatpush3.bf16.msra.mxu0 %v1546_v22  ;;  %1579 = vmatpush3.bf16.msra.mxu1 %v1578_v23  ;;  %v948_v22 = vld [vmem:[%s2393_s7 + $0x78] sm:$0xff]  ;;  %v1596_v23 = vpack.c.bf16 %v996_v16, %v995_v8 }
 0x37e   :  { %1549 = vmatprep.subr.bf16.mxu0 %v1548_v34  ;;  %1581 = vmatprep.subr.bf16.mxu1 %v1580_v40  ;;  %v1566_v32 = vpack.c.bf16 %v948_v22, %v947_v21  ;;  %v1598_v34 = vpack.c.bf16 %v980_v28, %v979_v24 }
 0x381   :  { %1551 = vmatpush3.bf16.msra.mxu0 %v1550_v44  ;;  %1583 = vmatpush3.bf16.msra.mxu1 %v1582_v0 }
 0x382   :  { %1553 = vmatprep.subr.bf16.mxu0 %v1552_v13  ;;  %1585 = vmatprep.subr.bf16.mxu1 %v1584_v7  ;;  %v886_v13 = vrot.slane %v881_v1, %v2029_v12  ;;  %v894_v7 = vrot.slane %v881_v1, %v2034_v17 }
 0x385   :  { %1555 = vmatpush3.bf16.msra.mxu0 %v1554_v25  ;;  %1587 = vmatpush3.bf16.msra.mxu1 %v1586_v42 }
 0x386   :  { %1557 = vmatprep.subr.bf16.mxu0 %v1556_v50  ;;  %1589 = vmatprep.subr.bf16.mxu1 %v1588_v55  ;;  %v912_v55 = vrot.slane %v907_v6, %v2029_v12 }
 0x389   :  { %1559 = vmatpush3.bf16.msra.mxu0 %v1558_v9  ;;  %1591 = vmatpush3.bf16.msra.mxu1 %v1590_v41 }
 0x38a   :  { %1561 = vmatprep.subr.bf16.mxu0 %v1560_v47  ;;  %1593 = vmatprep.subr.bf16.mxu1 %v1592_v56 }
 0x38d   :  { %1563 = vmatpush3.bf16.msra.mxu0 %v1562_v62  ;;  %1595 = vmatpush3.bf16.msra.mxu1 %v1594_v10 }
 0x38e   :  { %1565 = vmatprep.subr.bf16.mxu0 %v1564_v11  ;;  %1597 = vmatprep.subr.bf16.mxu1 %v1596_v23 }
 0x391   :  { %1567 = vmatpush3.bf16.msra.mxu0 %v1566_v32  ;;  %1599 = vmatpush3.bf16.msra.mxu1 %v1598_v34 }
 0x447   :  { %v797_v38 = vpop.f32.mrb[8].mxu0  ;;  %v868_v30 = vpop.f32.mrb[8].mxu1 }
 0x448   :  { %v798_v31 = vadd.f32 1e-05, %v797_v38  ;;  %v869_v40 = vadd.f32 1e-05, %v868_v30  ;;  %v799_v44 = vpop.f32.mrb[9].mxu0  ;;  %v870_v54 = vpop.f32.mrb[9].mxu1 }
 0x449   :  { %v800_v58 = vadd.f32 1e-05, %v799_v44  ;;  %v871_v0 = vadd.f32 1e-05, %v870_v54 }
 0x44a   :  { %1602 = vrsqrt.f32 %v798_v31 }
 0x44b   :  { %1604 = vrsqrt.f32 %v869_v40 }
 0x44c   :  { %1606 = vrsqrt.f32 %v800_v58 }
 0x44d   :  { %1608 = vrsqrt.f32 %v871_v0 }
 0x454   :  { %v1603_v2 = vpop.eup %1602 }
 0x455   :  { %v1605_v14 = vpop.eup %1604  ;;  %v877_v19 = vmul.f32 %v1603_v2, %v2132_v35 }
 0x456   :  { %v1607_v25 = vpop.eup %1606  ;;  %v879_v27 = vmul.f32 %v1605_v14, %v2136_v39 }
 0x457   :  { %v1609_v33 = vpop.eup %1608  ;;  %v878_v42 = vmul.f32 %v1607_v25, %v2140_v51  ;;  %v903_v50 = vmul.f32 %v886_v13, %v877_v19 }
 0x458   :  { %v880_v45 = vmul.f32 %v1609_v33, %v2144_v53  ;;  %v905_v60 = vmul.f32 %v894_v7, %v879_v27 }
 0x459   :  { %v904_v35 = vmul.f32 %v890_v15, %v878_v42  ;;  %v929_v39 = vadd.f32 %v912_v55, %v903_v50 }
 0x45a   :  { %v906_v4 = vmul.f32 %v898_v26, %v880_v45  ;;  %v931_v36 = vadd.f32 %v920_v3, %v905_v60 }
 0x45b   :  { %v930_v9 = vadd.f32 %v916_v43, %v904_v35 }
 0x45c   :  { %v932_v29 = vadd.f32 %v924_v46, %v906_v4 }
 0x45d   :  { %1068 = vmatprep.mubr.f32.mxu0 %v930_v9 }
 0x45e   :  { %1138 = vmatprep.mubr.f32.mxu1 %v932_v29  ;;  %1069 = vmatmul.mubr.f32.vlgmr.msra.gmra.mrb[10].mxu0 %v929_v39 }
 0x45f   :  { %1139 = vmatmul.mubr.f32.vlgmr.msra.gmra.mrb[10].mxu1 %v931_v36 }
 0x531   :  { %v1338_v18 = vpop.f32.mrb[10].mxu0 }
 0x532   :  { %v1373_v51 = vpop.f32.mrb[10].mxu1  ;;  %v1339_v12 = vpop.f32.mrb[11].mxu0 }
 0x533   :  { %v1340_v53 = vadd.f32 %v1339_v12, %v1338_v18  ;;  %v1374_v37 = vpop.f32.mrb[11].mxu1 }
 0x534   :  { %v1375_v41 = vadd.f32 %v1374_v37, %v1373_v51 }
 0x535   :  { %v1071_v17 = vadd.f32 %v1340_v53, %v1165_v20 }
 0x537   :  { %v1141_v47 = vadd.f32 %v1375_v41, %v1071_v17 }
 0x539   :  { %1144 = vst.msk [vmem:[#allocation2] sm:$0xff] %vm72_vm0, %v1141_v47 }
 0x53a   :  { %1621 = shalt.err (!%p1618_p4)
}
 0x53b   :  { %s1622_s0 = scalar_lea.hbm %s2395_s9, 128 }
 0x53c   :  { %p1623_p5 = scmp.ne.s32.totalorder %s2395_s9, %s1622_s0  ;;  %p1626_p6 = scmp.lt.u32.totalorder %s1622_s0, %s2395_s9 }
 0x53e   :  { %p1628_p7 = pnand %p1626_p6, %p1623_p5 }
 0x540   :  { %1631 = shalt.err (!%p1628_p7)
}
 0x541   :  { %1154 = dma.vmem_to_hbm [thread:$0]  %s1152_s28, 128, %s2395_s9, [#allocation3]  }
 0x542   :  { %1632 = dma.done.wait [#allocation3], 128  }
 0x543   :  { %1633 = vsyncadd [#allocation3], 4294967168 }
 0x544   :  { %1158 = vsyncpa [#allocation3], 1 }

</bundles_post_ra>
